<compile_context>
chip_gen: v5e
topology: v5e:2x2
jax: 0.10.0
libtpu: 0.0.40
codegen_flags: <defaults>
</compile_context>

<pallas_src>
import functools

import jax
import jax.numpy as jnp
from jax.experimental import pallas as pl
from jax.experimental.pallas import tpu as pltpu

_LANE = 128     # TPU lane width (last dim)
_SUBLANE = 8    # TPU sublane width (second-to-last dim)


def _round_up(x: int, m: int) -> int:
    return (x + m - 1) // m * m


def _pad2d(a, rows: int, cols: int):
    r, c = a.shape
    if r == rows and c == cols:
        return a
    return jnp.pad(a, ((0, rows - r), (0, cols - c)))


# -----------------------------------------------------------------------------
# One-time parameter preparation (hoisted out of the forward path).
# -----------------------------------------------------------------------------
def prepare_mlp_params(params, compute_dtype=jnp.bfloat16):
    """Pad weights/biases to lane multiples and cast ONCE.

    params: list of (W, b) with W of shape (in_dim, out_dim), b of shape (out_dim,).
    compute_dtype: dtype fed to the MXU (bf16 recommended on v5e/v6e/v7x);
                   accumulation is always f32, biases stay f32.
    """
    dims = [params[0][0].shape[0]] + [w.shape[1] for (w, _) in params]
    dims_p = [_round_up(d, _LANE) for d in dims]
    padded = []
    for li, (w, b) in enumerate(params):
        kp, np_ = dims_p[li], dims_p[li + 1]
        wp = _pad2d(jnp.asarray(w), kp, np_).astype(compute_dtype)
        bp = _pad2d(jnp.asarray(b).reshape(1, -1), 1, np_).astype(jnp.float32)
        padded.append((wp, bp))
    return dict(params=padded, dims=dims, dims_p=dims_p, compute_dtype=compute_dtype)


# -----------------------------------------------------------------------------
# Fused whole-MLP kernel: all weights resident in VMEM, intermediates never
# leave VMEM; one pallas_call for the full Linear(+ReLU) chain.
# -----------------------------------------------------------------------------
def _fused_mlp_kernel(*refs, num_layers: int):
    """refs = (x_ref, w0, b0, ..., w{L-1}, b{L-1}, o_ref)."""
    x_ref = refs[0]
    o_ref = refs[-1]
    wb = refs[1:-1]

    h = x_ref[...]
    for i in range(num_layers):
        w = wb[2 * i][...]
        b = wb[2 * i + 1][...]                       # (1, N) f32, broadcasts over rows
        acc = jnp.dot(h, w, preferred_element_type=jnp.float32) + b
        if i != num_layers - 1:                      # ReLU on all but the last layer
            acc = jnp.maximum(acc, 0.0)
            h = acc.astype(x_ref.dtype)              # back to the MXU input dtype
        else:
            h = acc
    o_ref[...] = h.astype(o_ref.dtype)


def _call_fused(x_p, padded_params, dims_p, out_dtype, bm, vmem_limit,
                single_buffer_weights):
    m_p = x_p.shape[0]
    num_layers = len(padded_params)
    wb_kw = {"pipeline_mode": pl.Buffered(1)} if single_buffer_weights else {}

    flat_inputs = [x_p]
    in_specs = [pl.BlockSpec((bm, dims_p[0]), lambda i: (i, 0))]
    for li, (wp, bp) in enumerate(padded_params):
        kp, np_ = dims_p[li], dims_p[li + 1]
        flat_inputs.append(wp)
        flat_inputs.append(bp)
        # Constant index_map -> weights/biases stay resident; single-buffered.
        in_specs.append(pl.BlockSpec((kp, np_), lambda i: (0, 0), **wb_kw))
        in_specs.append(pl.BlockSpec((1, np_), lambda i: (0, 0), **wb_kw))

    out_p = dims_p[-1]
    return pl.pallas_call(
        functools.partial(_fused_mlp_kernel, num_layers=num_layers),
        out_shape=jax.ShapeDtypeStruct((m_p, out_p), out_dtype),
        grid_spec=pltpu.PrefetchScalarGridSpec(
            num_scalar_prefetch=0,
            grid=(m_p // bm,),
            in_specs=in_specs,
            out_specs=pl.BlockSpec((bm, out_p), lambda i: (i, 0)),
        ),
        compiler_params=pltpu.CompilerParams(
            dimension_semantics=("parallel",),       # batch tiles shard across v7x TCs
            vmem_limit_bytes=vmem_limit,
        ),
    )(*flat_inputs)


# -----------------------------------------------------------------------------
# Fallback: per-layer M/N/K-tiled matmul (used when the fused resident-weight
# design exceeds the per-TensorCore VMEM budget, e.g. wide layers on v7x).
# -----------------------------------------------------------------------------
def _linear_kernel(x_ref, w_ref, b_ref, o_ref, acc_ref, *, apply_relu: bool):
    k = pl.program_id(2)

    @pl.when(k == 0)
    def _():
        acc_ref[...] = jnp.zeros_like(acc_ref)

    acc_ref[...] += jnp.dot(x_ref[...], w_ref[...],
                            preferred_element_type=jnp.float32)

    @pl.when(k == pl.num_programs(2) - 1)
    def _():
        r = acc_ref[...] + b_ref[...]                # bias already f32
        if apply_relu:
            r = jnp.maximum(r, 0.0)
        o_ref[...] = r.astype(o_ref.dtype)


def _pick_tile(dim_p: int, cap: int = 512) -> int:
    for t in (512, 384, 256, 128):
        if t <= cap and dim_p % t == 0:
            return t
    return dim_p  # dims are padded to 128 multiples, so this is unreachable


def _linear_tiled(x_p, w_p, b_p, out_dtype, *, apply_relu, bm):
    m_p, k_p = x_p.shape
    n_p = w_p.shape[1]
    bn = _pick_tile(n_p)
    bk = _pick_tile(k_p)
    return pl.pallas_call(
        functools.partial(_linear_kernel, apply_relu=apply_relu),
        out_shape=jax.ShapeDtypeStruct((m_p, n_p), out_dtype),
        grid_spec=pltpu.PrefetchScalarGridSpec(
            num_scalar_prefetch=0,
            grid=(m_p // bm, n_p // bn, k_p // bk),
            in_specs=[
                pl.BlockSpec((bm, bk), lambda i, j, k: (i, k)),
                pl.BlockSpec((bk, bn), lambda i, j, k: (k, j)),
                pl.BlockSpec((1, bn), lambda i, j, k: (0, j)),
            ],
            out_specs=pl.BlockSpec((bm, bn), lambda i, j, k: (i, j)),
            scratch_shapes=[pltpu.VMEM((bm, bn), jnp.float32)],
        ),
        compiler_params=pltpu.CompilerParams(
            dimension_semantics=("parallel", "parallel", "arbitrary"),
            vmem_limit_bytes=64 << 20,
        ),
    )(x_p, w_p, b_p)


# -----------------------------------------------------------------------------
# Forward pass.
# -----------------------------------------------------------------------------
def mlp_layers_forward(x, prepared, *, block_m: int = 256,
                       vmem_budget_bytes: int = 48 << 20,
                       force_per_layer: bool = False):
    """MLPLayers.forward; `prepared` comes from prepare_mlp_params()."""
    M, D0 = x.shape
    dims, dims_p = prepared["dims"], prepared["dims_p"]
    padded_params = prepared["params"]
    cdt = prepared["compute_dtype"]
    assert D0 == dims[0], f"x feature dim {D0} != layers[0] {dims[0]}"

    # Batch tile: multiple of the sublane width; when there is enough batch,
    # keep at least two tiles so the 'parallel' axis shards across both v7x TCs.
    bm = min(_round_up(block_m, _SUBLANE), _round_up(M, _SUBLANE))
    if M > _SUBLANE:
        bm = min(bm, _round_up((M + 1) // 2, _SUBLANE))
    m_p = _round_up(M, bm)

    # Pad / cast activations only when actually required (aligned fast path).
    x_p = x if (m_p == M and dims_p[0] == D0) else _pad2d(x, m_p, dims_p[0])
    if x_p.dtype != cdt:
        x_p = x_p.astype(cdt)

    out_dtype = x.dtype
    cdt_b = jnp.dtype(cdt).itemsize
    out_b = jnp.dtype(out_dtype).itemsize

    # Per-TensorCore VMEM estimate for the fused, weights-resident design
    # (weights single-buffered; x/out tiles double-buffered; f32 intermediates).
    w_bytes = sum(wp.size * wp.dtype.itemsize + bp.size * bp.dtype.itemsize
                  for wp, bp in padded_params)
    fused_bytes = (w_bytes
                   + 2 * bm * dims_p[0] * cdt_b
                   + 2 * bm * dims_p[-1] * out_b
                   + 2 * bm * max(dims_p) * 4)

    if force_per_layer or fused_bytes > vmem_budget_bytes:
        # v7x-safe path for production-size layers: per-layer tiled matmuls.
        h = x_p
        num_layers = len(padded_params)
        for li, (wp, bp) in enumerate(padded_params):
            last = li == num_layers - 1
            h = _linear_tiled(h, wp, bp, out_dtype if last else cdt,
                              apply_relu=not last, bm=bm)
        y_p = h
    else:
        vmem_limit = int(min(64 << 20, max(32 << 20, 2 * fused_bytes)))
        try:
            y_p = _call_fused(x_p, padded_params, dims_p, out_dtype, bm,
                              vmem_limit, single_buffer_weights=True)
        except Exception:
            # Older jax without BlockSpec pipeline_mode support: default buffering.
            y_p = _call_fused(x_p, padded_params, dims_p, out_dtype, bm,
                              vmem_limit, single_buffer_weights=False)

    if m_p == M and dims_p[-1] == dims[-1]:
        return y_p
    return y_p[:M, :dims[-1]]


def init_mlp_params(key, layers):
    """Xavier-normal weights (stored as (in_dim, out_dim)), zero biases."""
    params = []
    for i in range(len(layers) - 1):
        in_dim, out_dim = layers[i], layers[i + 1]
        key, sub = jax.random.split(key)
        std = (2.0 / (in_dim + out_dim)) ** 0.5
        w = std * jax.random.normal(sub, (in_dim, out_dim), dtype=jnp.float32)
        b = jnp.zeros((out_dim,), dtype=jnp.float32)
        params.append((w, b))
    return params


if __name__ == "__main__":
    # Small shapes consistent with the module: layers = [32, 64, 16], batch = 256
    # (two 128-row batch tiles -> both v7x TensorCores busy under 'parallel').
    layers = [32, 64, 16]
    batch = 256

    key = jax.random.PRNGKey(0)
    key, xkey = jax.random.split(key)
    x = jax.random.normal(xkey, (batch, layers[0]), dtype=jnp.float32)
    params = init_mlp_params(key, layers)

    # Pure-JAX reference (same math as the PyTorch module).
    ref = x
    for i, (w, b) in enumerate(params):
        ref = ref @ w + b
        if i != len(params) - 1:
            ref = jnp.maximum(ref, 0.0)

    # 1) f32 compute path: matches the PyTorch module numerics.
    prep_f32 = prepare_mlp_params(params, compute_dtype=jnp.float32)
    out_f32 = jax.block_until_ready(mlp_layers_forward(x, prep_f32))
    assert out_f32.shape == (batch, layers[-1])
    assert jnp.allclose(out_f32, ref, atol=1e-5, rtol=1e-5)

    # 2) Default bf16 MXU path (f32 accumulate) — the recommended fast path.
    prep_bf16 = prepare_mlp_params(params)  # compute_dtype=bfloat16
    out_bf16 = jax.block_until_ready(mlp_layers_forward(x, prep_bf16))
    assert jnp.allclose(out_bf16, ref, atol=3e-2, rtol=3e-2)

    # 3) Per-layer tiled fallback (the path large v7x configurations take).
    out_fb = jax.block_until_ready(
        mlp_layers_forward(x, prep_f32, force_per_layer=True))
    assert jnp.allclose(out_fb, ref, atol=1e-5, rtol=1e-5)

    print("KERNEL_OK")
</pallas_src>

<mosaic_0001>
module attributes {stable_mosaic.version = 11 : i64} {
  func.func @_fused_mlp_kernel(%arg0: i32, %arg1: memref<128x128xf32, #tpu.memory_space<vmem>>, %arg2: memref<128x128xf32, #tpu.memory_space<vmem>>, %arg3: memref<1x128xf32, #tpu.memory_space<vmem>>, %arg4: memref<128x128xf32, #tpu.memory_space<vmem>>, %arg5: memref<1x128xf32, #tpu.memory_space<vmem>>, %arg6: memref<128x128xf32, #tpu.memory_space<vmem>>) attributes {dimension_semantics = [#tpu.dimension_semantics<parallel>], iteration_bounds = array<i64: 2>, scalar_prefetch = 0 : i64, scratch_operands = 0 : i64, tpu.core_type = #tpu.core_type<tc>, window_params = [{transform_indices = @transform_0, window_bounds = array<i64: 128, 128>}, {pipeline_mode = #tpu.pipeline_mode<synchronous>, transform_indices = @transform_1, window_bounds = array<i64: 128, 128>}, {pipeline_mode = #tpu.pipeline_mode<synchronous>, transform_indices = @transform_2, window_bounds = array<i64: 1, 128>}, {pipeline_mode = #tpu.pipeline_mode<synchronous>, transform_indices = @transform_3, window_bounds = array<i64: 128, 128>}, {pipeline_mode = #tpu.pipeline_mode<synchronous>, transform_indices = @transform_4, window_bounds = array<i64: 1, 128>}, {transform_indices = @transform_5, window_bounds = array<i64: 128, 128>}]} {
    %c0 = arith.constant 0 : index
    %c0_0 = arith.constant 0 : index
    %0 = vector.load %arg1[%c0, %c0_0] : memref<128x128xf32, #tpu.memory_space<vmem>>, vector<128x128xf32>
    %c0_1 = arith.constant 0 : index
    %c0_2 = arith.constant 0 : index
    %1 = vector.load %arg2[%c0_1, %c0_2] : memref<128x128xf32, #tpu.memory_space<vmem>>, vector<128x128xf32>
    %c0_3 = arith.constant 0 : index
    %c0_4 = arith.constant 0 : index
    %2 = vector.load %arg3[%c0_3, %c0_4] : memref<1x128xf32, #tpu.memory_space<vmem>>, vector<1x128xf32>
    %cst = arith.constant dense<0.000000e+00> : vector<128x128xf32>
    %3 = tpu.matmul %0, %1, %cst {dimension_numbers = #tpu.dot_dimension_numbers<[1], [0], [0], [1], [0, 0, 1, 1], [], []>} : vector<128x128xf32>, vector<128x128xf32>, vector<128x128xf32> -> vector<128x128xf32>
    %4 = vector.broadcast %2 : vector<1x128xf32> to vector<128x128xf32>
    %5 = arith.addf %3, %4 : vector<128x128xf32>
    %cst_5 = arith.constant 0.000000e+00 : f32
    %6 = vector.broadcast %cst_5 : f32 to vector<128x128xf32>
    %7 = arith.maximumf %5, %6 : vector<128x128xf32>
    %c0_6 = arith.constant 0 : index
    %c0_7 = arith.constant 0 : index
    %8 = vector.load %arg4[%c0_6, %c0_7] : memref<128x128xf32, #tpu.memory_space<vmem>>, vector<128x128xf32>
    %c0_8 = arith.constant 0 : index
    %c0_9 = arith.constant 0 : index
    %9 = vector.load %arg5[%c0_8, %c0_9] : memref<1x128xf32, #tpu.memory_space<vmem>>, vector<1x128xf32>
    %cst_10 = arith.constant dense<0.000000e+00> : vector<128x128xf32>
    %10 = tpu.matmul %7, %8, %cst_10 {dimension_numbers = #tpu.dot_dimension_numbers<[1], [0], [0], [1], [0, 0, 1, 1], [], []>} : vector<128x128xf32>, vector<128x128xf32>, vector<128x128xf32> -> vector<128x128xf32>
    %11 = vector.broadcast %9 : vector<1x128xf32> to vector<128x128xf32>
    %12 = arith.addf %10, %11 : vector<128x128xf32>
    %c0_11 = arith.constant 0 : index
    %c0_12 = arith.constant 0 : index
    %13 = vector.load %arg6[%c0_11, %c0_12] : memref<128x128xf32, #tpu.memory_space<vmem>>, vector<128x128xf32>
    tpu.vector_store %arg6[%c0_11, %c0_12], %12 {strides = array<i32>} : memref<128x128xf32, #tpu.memory_space<vmem>>, vector<128x128xf32>,
    return
  }
  func.func @transform_0(%arg0: i32) -> (i32, i32) {
    %c0_i32 = arith.constant 0 : i32
    %c0_i32_0 = arith.constant 0 : i32
    return %arg0, %c0_i32 : i32, i32
  }
  func.func @transform_1(%arg0: i32) -> (i32, i32) {
    %c0_i32 = arith.constant 0 : i32
    %c0_i32_0 = arith.constant 0 : i32
    %c0_i32_1 = arith.constant 0 : i32
    return %c0_i32, %c0_i32_0 : i32, i32
  }
  func.func @transform_2(%arg0: i32) -> (i32, i32) {
    %c0_i32 = arith.constant 0 : i32
    %c0_i32_0 = arith.constant 0 : i32
    %c0_i32_1 = arith.constant 0 : i32
    return %c0_i32, %c0_i32_0 : i32, i32
  }
  func.func @transform_3(%arg0: i32) -> (i32, i32) {
    %c0_i32 = arith.constant 0 : i32
    %c0_i32_0 = arith.constant 0 : i32
    %c0_i32_1 = arith.constant 0 : i32
    return %c0_i32, %c0_i32_0 : i32, i32
  }
  func.func @transform_4(%arg0: i32) -> (i32, i32) {
    %c0_i32 = arith.constant 0 : i32
    %c0_i32_0 = arith.constant 0 : i32
    %c0_i32_1 = arith.constant 0 : i32
    return %c0_i32, %c0_i32_0 : i32, i32
  }
  func.func @transform_5(%arg0: i32) -> (i32, i32) {
    %c0_i32 = arith.constant 0 : i32
    %c0_i32_0 = arith.constant 0 : i32
    return %arg0, %c0_i32 : i32, i32
  }
}

module attributes {stable_mosaic.version = 11 : i64} {
  func.func @_fused_mlp_kernel(%arg0: i32, %arg1: memref<128x128xf32, #tpu.memory_space<vmem>>, %arg2: memref<128x128xf32, #tpu.memory_space<vmem>>, %arg3: memref<1x128xf32, #tpu.memory_space<vmem>>, %arg4: memref<128x128xf32, #tpu.memory_space<vmem>>, %arg5: memref<1x128xf32, #tpu.memory_space<vmem>>, %arg6: memref<128x128xf32, #tpu.memory_space<vmem>>) attributes {dimension_semantics = [#tpu.dimension_semantics<parallel>], iteration_bounds = array<i64: 2>, scalar_prefetch = 0 : i64, scratch_operands = 0 : i64, tpu.core_type = #tpu.core_type<tc>, window_params = [{transform_indices = @transform_0, window_bounds = array<i64: 128, 128>}, {pipeline_mode = #tpu.pipeline_mode<synchronous>, transform_indices = @transform_1, window_bounds = array<i64: 128, 128>}, {pipeline_mode = #tpu.pipeline_mode<synchronous>, transform_indices = @transform_2, window_bounds = array<i64: 1, 128>}, {pipeline_mode = #tpu.pipeline_mode<synchronous>, transform_indices = @transform_3, window_bounds = array<i64: 128, 128>}, {pipeline_mode = #tpu.pipeline_mode<synchronous>, transform_indices = @transform_4, window_bounds = array<i64: 1, 128>}, {transform_indices = @transform_5, window_bounds = array<i64: 128, 128>}]} {
    %c0 = arith.constant 0 : index
    %c0_0 = arith.constant 0 : index
    %0 = vector.load %arg1[%c0, %c0_0] : memref<128x128xf32, #tpu.memory_space<vmem>>, vector<128x128xf32>
    %c0_1 = arith.constant 0 : index
    %c0_2 = arith.constant 0 : index
    %1 = vector.load %arg2[%c0_1, %c0_2] : memref<128x128xf32, #tpu.memory_space<vmem>>, vector<128x128xf32>
    %c0_3 = arith.constant 0 : index
    %c0_4 = arith.constant 0 : index
    %2 = vector.load %arg3[%c0_3, %c0_4] : memref<1x128xf32, #tpu.memory_space<vmem>>, vector<1x128xf32>
    %cst = arith.constant dense<0.000000e+00> : vector<128x128xf32>
    %3 = tpu.matmul %0, %1, %cst {dimension_numbers = #tpu.dot_dimension_numbers<[1], [0], [0], [1], [0, 0, 1, 1], [], []>} : vector<128x128xf32>, vector<128x128xf32>, vector<128x128xf32> -> vector<128x128xf32>
    %4 = vector.broadcast %2 : vector<1x128xf32> to vector<128x128xf32>
    %5 = arith.addf %3, %4 : vector<128x128xf32>
    %cst_5 = arith.constant 0.000000e+00 : f32
    %6 = vector.broadcast %cst_5 : f32 to vector<128x128xf32>
    %7 = arith.maximumf %5, %6 : vector<128x128xf32>
    %c0_6 = arith.constant 0 : index
    %c0_7 = arith.constant 0 : index
    %8 = vector.load %arg4[%c0_6, %c0_7] : memref<128x128xf32, #tpu.memory_space<vmem>>, vector<128x128xf32>
    %c0_8 = arith.constant 0 : index
    %c0_9 = arith.constant 0 : index
    %9 = vector.load %arg5[%c0_8, %c0_9] : memref<1x128xf32, #tpu.memory_space<vmem>>, vector<1x128xf32>
    %cst_10 = arith.constant dense<0.000000e+00> : vector<128x128xf32>
    %10 = tpu.matmul %7, %8, %cst_10 {dimension_numbers = #tpu.dot_dimension_numbers<[1], [0], [0], [1], [0, 0, 1, 1], [], []>} : vector<128x128xf32>, vector<128x128xf32>, vector<128x128xf32> -> vector<128x128xf32>
    %11 = vector.broadcast %9 : vector<1x128xf32> to vector<128x128xf32>
    %12 = arith.addf %10, %11 : vector<128x128xf32>
    %c0_11 = arith.constant 0 : index
    %c0_12 = arith.constant 0 : index
    %13 = vector.load %arg6[%c0_11, %c0_12] : memref<128x128xf32, #tpu.memory_space<vmem>>, vector<128x128xf32>
    tpu.vector_store %arg6[%c0_11, %c0_12], %12 {strides = array<i32>} : memref<128x128xf32, #tpu.memory_space<vmem>>, vector<128x128xf32>,
    return
  }
  func.func @transform_0(%arg0: i32) -> (i32, i32) {
    %c0_i32 = arith.constant 0 : i32
    %c0_i32_0 = arith.constant 0 : i32
    return %arg0, %c0_i32 : i32, i32
  }
  func.func @transform_1(%arg0: i32) -> (i32, i32) {
    %c0_i32 = arith.constant 0 : i32
    %c0_i32_0 = arith.constant 0 : i32
    %c0_i32_1 = arith.constant 0 : i32
    return %c0_i32, %c0_i32_0 : i32, i32
  }
  func.func @transform_2(%arg0: i32) -> (i32, i32) {
    %c0_i32 = arith.constant 0 : i32
    %c0_i32_0 = arith.constant 0 : i32
    %c0_i32_1 = arith.constant 0 : i32
    return %c0_i32, %c0_i32_0 : i32, i32
  }
  func.func @transform_3(%arg0: i32) -> (i32, i32) {
    %c0_i32 = arith.constant 0 : i32
    %c0_i32_0 = arith.constant 0 : i32
    %c0_i32_1 = arith.constant 0 : i32
    return %c0_i32, %c0_i32_0 : i32, i32
  }
  func.func @transform_4(%arg0: i32) -> (i32, i32) {
    %c0_i32 = arith.constant 0 : i32
    %c0_i32_0 = arith.constant 0 : i32
    %c0_i32_1 = arith.constant 0 : i32
    return %c0_i32, %c0_i32_0 : i32, i32
  }
  func.func @transform_5(%arg0: i32) -> (i32, i32) {
    %c0_i32 = arith.constant 0 : i32
    %c0_i32_0 = arith.constant 0 : i32
    return %arg0, %c0_i32 : i32, i32
  }
}

</mosaic_0001>

<bundles_post_ra>
// kernel: tpu_custom_call.1
= control target key start
LH: loop header
LB: loop body
LE: loop exit
PB: predicated region body
PF: predicated region fallthrough
CT: control target
= control target key end

     0   :  { %10 = vsyncpa [#allocation3], 0  ;;  %s1126_s0 = inlined_call_operand.hbm [shape: f32[256,128], index: 0, kind: input, shape index: {}]   ;;  %s1127_s1 = inlined_call_operand.hbm [shape: f32[128,128], index: 1, kind: input, shape index: {}]   ;;  %s1128_s2 = inlined_call_operand.vmem [shape: f32[1,128], index: 2, kind: input, shape index: {}]   ;;  %s1129_s3 = inlined_call_operand.hbm [shape: f32[128,128], index: 3, kind: input, shape index: {}]   ;;  %s1130_s4 = inlined_call_operand.vmem [shape: f32[1,128], index: 4, kind: input, shape index: {}]   ;;  %s1131_s5 = inlined_call_operand.hbm [shape: f32[256,128], index: 5, kind: output, shape index: {}]  }
   0x1   :  { %12 = vsyncpa [#allocation3 + $0x1], 0 }
   0x2   :  { %13 = vsyncpa [#allocation6], 0 }
   0x3   :  { %14 = vsyncpa [#allocation4], 0 }
   0x4   :  { %16 = vsyncpa [#allocation4 + $0x1], 0  ;;  %s929_s18 = smov 0   ;;  %s931_s19 = smov 0  }
   0x5   :  { %s933_s20 = smov 0   ;;  %s935_s21 = smov 0  }
   0x6 LB: > { %s950_s22 = sadd.s32 4294967295, %s891_s21   ;;  %s606_s23 = sadd.s32 4294967294, %s891_s21   ;;  %s891_s21 = sphi %s935_s21, %s1143_s21   ;;  %s887_s20 = sphi %s933_s20, %s1142_s20   ;;  %s883_s19 = sphi %s931_s19, %s1141_s19   ;;  %s879_s18 = sphi %s929_s18, %s1140_s18  }
   0x7   : > { %p42_p0 = scmp.ne.s32.totalorder %s883_s19, %s879_s18  ;;  %p43_p1 = scmp.eq.s32.totalorder %s950_s22, 0 }
   0x8   : > { %p150_p2 = scmp.eq.s32.totalorder %s950_s22, 1  ;;  %p156_p3 = scmp.eq.s32.totalorder %s606_s23, 1 }
   0x9   : > { %p959_p4 = por %p43_p1, %p42_p0  ;;  %p607_p5 = scmp.ge.s32.totalorder %s891_s21, 1 }
   0xa   : > { %p964_p6 = por %p156_p3, %p42_p0  ;;  %p163_p7 = scmp.lt.s32.totalorder %s891_s21, 3 }
   0xb   : > { %s174_s28 = sshll.u32 %s1127_s1, 4  ;;  %s893_s30 = smov [#allocation5]   ;;  %s175_s28 = int_to_ptr.hbm [resolvable:$true] %s174_s28 }
   0xc   : > { %p972_p8 = pnand %p607_p5, %p163_p7  ;;  %s176_s6 = sshll.u32 %s893_s30, 4  ;;  %s177_s6 = int_to_ptr.vmem [resolvable:$true] %s176_s6 }
   0xd   : > { %s191_s9 = sshll.u32 %s1129_s3, 4  ;;  %s1132_s10 = smov 128   ;;  %s192_s9 = int_to_ptr.hbm [resolvable:$true] %s191_s9 }
   0xe   : > { %p670_p9 = pneg %p972_p8  ;;  %s895_s11 = smov 8  }
   0xf   : > { %s896_s12 = smov [#allocation7]   ;;  %s991_s14 = sadd.s32 1, %s891_s21  }
  0x10   : > { %p671_p10 = pnand %p670_p9, %p43_p1  ;;  %s193_s13 = sshll.u32 %s896_s12, 4  ;;  %s194_s13 = int_to_ptr.vmem [resolvable:$true] %s193_s13 }
  0x11   : > { %s29_s15 = sadd.s32 1, %s887_s20  ;;  %s26_s16 = ssub.s32 %s891_s21, %s991_s14 }
  0x12   : > { %673 = dma.hbm_to_vmem [thread:$0]  (!%p671_p10), %s175_s28, 2048, %s177_s6, [#allocation6], %s1132_s10, %s1132_s10, %s895_s11  }
  0x13   : > { %676 = dma.hbm_to_vmem [thread:$0]  (!%p671_p10), %s192_s9, 2048, %s194_s13, [#allocation6], %s1132_s10, %s1132_s10, %s895_s11  }
  0x14   : > { %p36_p12 = scmp.ne.s32.totalorder %s887_s20, %s883_s19  ;;  %p27_p13 = scmp.eq.s32.totalorder %s26_s16, 0 }
  0x15   : > { %p37_p0 = scmp.eq.s32.totalorder %s891_s21, 0  ;;  %p687_p5 = scmp.lt.s32.totalorder %s891_s21, 2 }
  0x16   : > { %p1001_p3 = por %p150_p2, %p36_p12  ;;  %s210_s26 = sand.u32 1, %s887_s20  }
  0x17   : > { %s1007_s23 = scalar_select %p27_p13, %s887_s20, %s29_s15  }
  0x18   : > { %p38_p7 = por %p37_p0, %p36_p12  ;;  %s611_s27 = sshll.u32 %s210_s26, 7 }
  0x19   : > { %s624_s28 = sshll.u32 %s891_s21, 7  ;;  %s214_s8 = scalar_lea.vmem [#allocation2], %s611_s27 }
  0x1a   : > { %s219_s7 = scalar_lea.hbm %s1126_s0, %s624_s28  ;;  %s222_s9 = sshll.u32 %s214_s8, 4  ;;  %s223_s9 = int_to_ptr.vmem [resolvable:$true] %s222_s9 }
  0x1b   : > { %s220_s12 = sshll.u32 %s219_s7, 4  ;;  %p1014_p2 = pnand %p687_p5, %p38_p7  ;;  %s221_s12 = int_to_ptr.hbm [resolvable:$true] %s220_s12 }
  0x1c   : > { %s211_s15 = scalar_lea.sflag [#allocation3], %s210_s26  ;;  %s791_s16 = sshra.s32 %s221_s12, 4  ;;  %s792_s16 = int_to_ptr.hbm [resolvable:$true] %s791_s16 }
  0x1d   : > { %s793_s10 = scalar_lea.hbm %s792_s16, 128  ;;  %p795_p10 = pneg %p1014_p2 }
  0x1e   : > { %p794_p9 = scmp.ne.s32.totalorder %s792_s16, %s793_s10  ;;  %s798_s30 = scalar_lea.hbm %s1126_s0, 256 }
  0x1f   : > { %p799_p0 = scmp.lt.s32.totalorder %s792_s16, %s1126_s0  ;;  %p800_p5 = scmp.lt.s32.totalorder %s798_s30, %s793_s10 }
  0x20   : > { %p796_p12 = pnand %p795_p10, %p794_p9 }
  0x21   : > { %p801_p7 = por %p800_p5, %p799_p0 }
  0x22   : > { %p797_p13 = pneg %p796_p12 }
  0x24   : > { %p802_p11 = pnand %p801_p7, %p797_p13 }
  0x26   : > { %805 = shalt.err (!%p802_p11)
}
  0x27   : > { %s1138_s26 = smov 128   ;;  %234 = sbr.rel (%p972_p8) target bundleno = 409 (0x199), region = 40 }
  0x28   : > { %680 = dma.hbm_to_vmem [thread:$0]  (!%p1014_p2), %s221_s12, 2048, %s223_s9, %s211_s15, %s1138_s26, %s1138_s26, %s895_s11  }
  0x29   : > { %s1034_s8 = sand.u32 (!%p972_p8), 1, %s883_s19  }
  0x2a   : > { %s615_s10 = sshll.u32 (!%p972_p8), %s1034_s8, 7  ;;  %s237_s16 = scalar_lea.sflag (!%p972_p8), [#allocation3], %s1034_s8 }
  0x2b   : > { %s1040_s28 = scalar_lea.vmem (!%p972_p8), [#allocation2], %s615_s10 }
  0x2c   : > { %866 = dma.done.wait (%p959_p4), %s237_s16, 2048  }
  0x2d   : > { %868 = vsyncadd (%p959_p4), %s237_s16, 4294965248 }
  0x2e   : > { %870 = dma.done.wait (%p43_p1), [#allocation6], 4096  }
  0x2f   : > { %872 = vsyncadd (%p43_p1), [#allocation6], 4294963200  ;;  %v311_v0 = vld [vmem:[#allocation5 + $0x78] sm:$0xff]  ;;  %v310_v1 = vld [vmem:[#allocation5 + $0x70] sm:$0xff]  ;;  %s1074_s12 = scalar_lea.vmem [#allocation8], %s615_s10  ;;  %s625_s13 = sshll.u32 %s950_s22, 7 }
  0x30   : > { %626 = vmatpush.msra.mxu2 %v311_v0  ;;  %316 = vmatpush.msra.mxu0 %v311_v0  ;;  %v309_v2 = vld [vmem:[#allocation5 + $0x68] sm:$0xff]  ;;  %v308_v3 = vld [vmem:[#allocation5 + $0x60] sm:$0xff]  ;;  %v307_v4 = vld [vmem:[#allocation5 + $0x58] sm:$0xff]  ;;  %s510_s30 = scalar_lea.hbm %s1131_s5, %s625_s13  ;;  %s511_s6 = sshll.u32 %s1074_s12, 4  ;;  %s512_s6 = int_to_ptr.vmem [resolvable:$true] %s511_s6 }
  0x31   : > { %v306_v5 = vld [vmem:[#allocation5 + $0x50] sm:$0xff]  ;;  %v305_v6 = vld [vmem:[#allocation5 + $0x48] sm:$0xff]  ;;  %v304_v7 = vld [vmem:[#allocation5 + $0x40] sm:$0xff]  ;;  %s513_s7 = sshll.u32 %s510_s30, 4  ;;  %s499_s26 = scalar_lea.sflag [#allocation4], %s1034_s8  ;;  %s514_s7 = int_to_ptr.hbm [resolvable:$true] %s513_s7 }
  0x32   : > { %627 = vmatpush.msra.mxu2 %v310_v1  ;;  %317 = vmatpush.msra.mxu0 %v310_v1  ;;  %v303_v8 = vld [vmem:[#allocation5 + $0x38] sm:$0xff]  ;;  %v302_v9 = vld [vmem:[#allocation5 + $0x30] sm:$0xff]  ;;  %v301_v10 = vld [vmem:[#allocation5 + $0x28] sm:$0xff]  ;;  %s835_s10 = sshra.s32 %s514_s7, 4  ;;  %s841_s24 = scalar_lea.hbm %s1131_s5, 256  ;;  %s836_s10 = int_to_ptr.hbm [resolvable:$true] %s835_s10 }
  0x33   : > { %v300_v11 = vld [vmem:[#allocation5 + $0x20] sm:$0xff]  ;;  %v299_v12 = vld [vmem:[#allocation5 + $0x18] sm:$0xff]  ;;  %v298_v13 = vld [vmem:[#allocation5 + $0x10] sm:$0xff]  ;;  %s837_s16 = scalar_lea.hbm %s836_s10, 128  ;;  %p842_p11 = scmp.lt.s32.totalorder %s836_s10, %s1131_s5 }
  0x34   : > { %628 = vmatpush.msra.mxu2 %v309_v2  ;;  %318 = vmatpush.msra.mxu0 %v309_v2  ;;  %v297_v14 = vld [vmem:[#allocation5 + $0x8] sm:$0xff]  ;;  %v296_v15 = vld [vmem:[#allocation5] sm:$0xff]  ;;  %v290_v20 = vld [vmem:[%s1040_s28 + $0x50] sm:$0xff]  ;;  %p838_p1 = scmp.ne.s32.totalorder %s836_s10, %s837_s16  ;;  %p843_p2 = scmp.lt.s32.totalorder %s841_s24, %s837_s16 }
  0x35   : > { %v288_v16 = vld [vmem:[%s1040_s28 + $0x40] sm:$0xff]  ;;  %v289_v18 = vld [vmem:[%s1040_s28 + $0x48] sm:$0xff]  ;;  %v282_v21 = vld [vmem:[%s1040_s28 + $0x10] sm:$0xff] }
  0x36   : > { %629 = vmatpush.msra.mxu2 %v308_v3  ;;  %319 = vmatpush.msra.mxu0 %v308_v3  ;;  %v280_v17 = vld [vmem:[%s1040_s28] sm:$0xff]  ;;  %v281_v19 = vld [vmem:[%s1040_s28 + $0x8] sm:$0xff]  ;;  %v291_v22 = vld [vmem:[%s1040_s28 + $0x58] sm:$0xff]  ;;  %p839_p4 = pnand %p838_p1, %p1001_p3  ;;  %p844_p9 = por %p843_p2, %p842_p11 }
  0x37   : > { %v283_v23 = vld [vmem:[%s1040_s28 + $0x18] sm:$0xff]  ;;  %v411_v25 = vld [vmem:[#allocation7 + $0x70] sm:$0xff]  ;;  %v410_v26 = vld [vmem:[#allocation7 + $0x68] sm:$0xff] }
  0x38   : > { %630 = vmatpush.msra.mxu2 %v307_v4  ;;  %320 = vmatpush.msra.mxu0 %v307_v4  ;;  %v412_v24 = vld [vmem:[#allocation7 + $0x78] sm:$0xff]  ;;  %v409_v27 = vld [vmem:[#allocation7 + $0x60] sm:$0xff]  ;;  %v407_v31 = vld [vmem:[#allocation7 + $0x50] sm:$0xff]  ;;  %p840_p8 = pneg %p839_p4 }
  0x39   : > { %642 = vmatpush.msra.mxu3 %v412_v24  ;;  %417 = vmatpush.msra.mxu1 %v412_v24  ;;  %v292_v28 = vld [vmem:[%s1040_s28 + $0x60] sm:$0xff]  ;;  %v408_v30 = vld [vmem:[#allocation7 + $0x58] sm:$0xff]  ;;  %v406_v32 = vld [vmem:[#allocation7 + $0x48] sm:$0xff] }
  0x3a   : > { %631 = vmatpush.msra.mxu2 %v306_v5  ;;  %321 = vmatpush.msra.mxu0 %v306_v5  ;;  %v284_v29 = vld [vmem:[%s1040_s28 + $0x20] sm:$0xff]  ;;  %v293_v34 = vld [vmem:[%s1040_s28 + $0x68] sm:$0xff]  ;;  %v404_v36 = vld [vmem:[#allocation7 + $0x38] sm:$0xff]  ;;  %p845_p10 = pnand %p844_p9, %p840_p8 }
  0x3b   : > { %643 = vmatpush.msra.mxu3 %v411_v25  ;;  %418 = vmatpush.msra.mxu1 %v411_v25  ;;  %v405_v33 = vld [vmem:[#allocation7 + $0x40] sm:$0xff]  ;;  %v285_v35 = vld [vmem:[%s1040_s28 + $0x28] sm:$0xff]  ;;  %v403_v37 = vld [vmem:[#allocation7 + $0x30] sm:$0xff] }
  0x3c   : > { %632 = vmatpush.msra.mxu2 %v305_v6  ;;  %322 = vmatpush.msra.mxu0 %v305_v6  ;;  %v402_v38 = vld [vmem:[#allocation7 + $0x28] sm:$0xff]  ;;  %v401_v39 = vld [vmem:[#allocation7 + $0x20] sm:$0xff]  ;;  %v294_v40 = vld [vmem:[%s1040_s28 + $0x70] sm:$0xff] }
  0x3d   : > { %644 = vmatpush.msra.mxu3 %v410_v26  ;;  %419 = vmatpush.msra.mxu1 %v410_v26  ;;  %v286_v41 = vld [vmem:[%s1040_s28 + $0x30] sm:$0xff]  ;;  %v400_v42 = vld [vmem:[#allocation7 + $0x18] sm:$0xff]  ;;  %v398_v46 = vld [vmem:[#allocation7 + $0x8] sm:$0xff] }
  0x3e   : > { %633 = vmatpush.msra.mxu2 %v304_v7  ;;  %323 = vmatpush.msra.mxu0 %v304_v7  ;;  %v295_v43 = vld [vmem:[%s1040_s28 + $0x78] sm:$0xff]  ;;  %v399_v45 = vld [vmem:[#allocation7 + $0x10] sm:$0xff]  ;;  %v397_v47 = vld [vmem:[#allocation7] sm:$0xff] }
  0x3f   : > { %645 = vmatpush.msra.mxu3 %v409_v27  ;;  %420 = vmatpush.msra.mxu1 %v409_v27  ;;  %v287_v44 = vld [vmem:[%s1040_s28 + $0x38] sm:$0xff]  ;;  %v729_v48 = vld [vmem:[%s1128_s2] ss:$0 sm:$0xff] }
  0x40   : > { %634 = vmatpush.msra.mxu2 %v303_v8  ;;  %324 = vmatpush.msra.mxu0 %v303_v8 }
  0x41   : > { %646 = vmatpush.msra.mxu3 %v408_v30  ;;  %421 = vmatpush.msra.mxu1 %v408_v30 }
  0x42   : > { %635 = vmatpush.msra.mxu2 %v302_v9  ;;  %325 = vmatpush.msra.mxu0 %v302_v9 }
  0x43   : > { %647 = vmatpush.msra.mxu3 %v407_v31  ;;  %422 = vmatpush.msra.mxu1 %v407_v31 }
  0x44   : > { %636 = vmatpush.msra.mxu2 %v301_v10  ;;  %326 = vmatpush.msra.mxu0 %v301_v10 }
  0x45   : > { %648 = vmatpush.msra.mxu3 %v406_v32  ;;  %423 = vmatpush.msra.mxu1 %v406_v32 }
  0x46   : > { %637 = vmatpush.msra.mxu2 %v300_v11  ;;  %327 = vmatpush.msra.mxu0 %v300_v11 }
  0x47   : > { %649 = vmatpush.msra.mxu3 %v405_v33  ;;  %424 = vmatpush.msra.mxu1 %v405_v33  ;;  %v730_v33 = vld [vmem:[%s1130_s4] ss:$0 sm:$0xff] }
  0x48   : > { %638 = vmatpush.msra.mxu2 %v299_v12  ;;  %328 = vmatpush.msra.mxu0 %v299_v12 }
  0x49   : > { %650 = vmatpush.msra.mxu3 %v404_v36  ;;  %425 = vmatpush.msra.mxu1 %v404_v36 }
  0x4a   : > { %639 = vmatpush.msra.mxu2 %v298_v13  ;;  %329 = vmatpush.msra.mxu0 %v298_v13 }
  0x4b   : > { %651 = vmatpush.msra.mxu3 %v403_v37  ;;  %426 = vmatpush.msra.mxu1 %v403_v37 }
  0x4c   : > { %640 = vmatpush.msra.mxu2 %v297_v14  ;;  %330 = vmatpush.msra.mxu0 %v297_v14 }
  0x4d   : > { %652 = vmatpush.msra.mxu3 %v402_v38  ;;  %427 = vmatpush.msra.mxu1 %v402_v38 }
  0x4e   : > { %641 = vmatpush.msra.mxu2 %v296_v15  ;;  %331 = vmatpush.msra.mxu0 %v296_v15 }
  0x4f   : > { %356 = vmatmul.f32.vlgmr.msra.gmra.mxu2 %v288_v16  ;;  %332 = vmatmul.f32.vlgmr.msra.gmra.mxu0 %v280_v17 }
  0x50   : > { %653 = vmatpush.msra.mxu3 %v401_v39  ;;  %428 = vmatpush.msra.mxu1 %v401_v39 }
  0x52   : > { %654 = vmatpush.msra.mxu3 %v400_v42  ;;  %429 = vmatpush.msra.mxu1 %v400_v42 }
  0x54   : > { %655 = vmatpush.msra.mxu3 %v399_v45  ;;  %430 = vmatpush.msra.mxu1 %v399_v45 }
  0x56   : > { %656 = vmatpush.msra.mxu3 %v398_v46  ;;  %431 = vmatpush.msra.mxu1 %v398_v46 }
  0x57   : > { %359 = vmatmul.f32.gmra.mxu2 %v289_v18  ;;  %335 = vmatmul.f32.gmra.mxu0 %v281_v19 }
  0x58   : > { %657 = vmatpush.msra.mxu3 %v397_v47  ;;  %432 = vmatpush.msra.mxu1 %v397_v47 }
  0x5f   : > { %362 = vmatmul.f32.gmra.mxu2 %v290_v20  ;;  %338 = vmatmul.f32.gmra.mxu0 %v282_v21 }
  0x67   : > { %365 = vmatmul.f32.gmra.mxu2 %v291_v22  ;;  %341 = vmatmul.f32.gmra.mxu0 %v283_v23 }
  0x6f   : > { %368 = vmatmul.f32.gmra.mxu2 %v292_v28  ;;  %344 = vmatmul.f32.gmra.mxu0 %v284_v29 }
  0x77   : > { %371 = vmatmul.f32.gmra.mxu2 %v293_v34  ;;  %347 = vmatmul.f32.gmra.mxu0 %v285_v35 }
  0x7f   : > { %374 = vmatmul.f32.gmra.mxu2 %v294_v40  ;;  %350 = vmatmul.f32.gmra.mxu0 %v286_v41 }
  0x87   : > { %377 = vmatmul.f32.gmra.mxu2 %v295_v43  ;;  %353 = vmatmul.f32.gmra.mxu0 %v287_v44 }
  0xcc   : > { %v333_v49 = vpop.f32.mrf.mxu0 }
  0xcd   : > { %v334_v50 = vadd.f32 %v729_v48, %v333_v49 }
  0xcf   : > { %v381_v51 = vmax.f32 %v334_v50, 0.0 }
  0xd1   : > { %433 = vmatmul.f32.vlgmr.msra.gmra.mxu1 %v381_v51 }
  0xd2   : > { %v357_v52 = vpop.f32.mrf.mxu2 }
  0xd3   : > { %v358_v53 = vadd.f32 %v729_v48, %v357_v52 }
  0xd4   : > { %v336_v54 = vpop.f32.mrf.mxu0 }
  0xd5   : > { %v389_v55 = vmax.f32 %v358_v53, 0.0  ;;  %v337_v56 = vadd.f32 %v729_v48, %v336_v54 }
  0xd7   : > { %457 = vmatmul.f32.vlgmr.msra.gmra.mxu3 %v389_v55  ;;  %v382_v57 = vmax.f32 %v337_v56, 0.0 }
  0xd9   : > { %436 = vmatmul.f32.gmra.mxu1 %v382_v57 }
  0xda   : > { %v360_v58 = vpop.f32.mrf.mxu2 }
  0xdb   : > { %v361_v59 = vadd.f32 %v729_v48, %v360_v58 }
  0xdc   : > { %v339_v60 = vpop.f32.mrf.mxu0 }
  0xdd   : > { %v390_v61 = vmax.f32 %v361_v59, 0.0  ;;  %v340_v62 = vadd.f32 %v729_v48, %v339_v60 }
  0xdf   : > { %460 = vmatmul.f32.gmra.mxu3 %v390_v61  ;;  %v383_v63 = vmax.f32 %v340_v62, 0.0 }
  0xe1   : > { %439 = vmatmul.f32.gmra.mxu1 %v383_v63 }
  0xe2   : > { %v363_v0 = vpop.f32.mrf.mxu2 }
  0xe3   : > { %v364_v1 = vadd.f32 %v729_v48, %v363_v0 }
  0xe4   : > { %v342_v2 = vpop.f32.mrf.mxu0 }
  0xe5   : > { %v391_v3 = vmax.f32 %v364_v1, 0.0  ;;  %v343_v4 = vadd.f32 %v729_v48, %v342_v2 }
  0xe7   : > { %463 = vmatmul.f32.gmra.mxu3 %v391_v3  ;;  %v384_v5 = vmax.f32 %v343_v4, 0.0 }
  0xe9   : > { %442 = vmatmul.f32.gmra.mxu1 %v384_v5 }
  0xea   : > { %v366_v6 = vpop.f32.mrf.mxu2 }
  0xeb   : > { %v367_v7 = vadd.f32 %v729_v48, %v366_v6 }
  0xec   : > { %v345_v8 = vpop.f32.mrf.mxu0 }
  0xed   : > { %v392_v9 = vmax.f32 %v367_v7, 0.0  ;;  %v346_v10 = vadd.f32 %v729_v48, %v345_v8 }
  0xef   : > { %466 = vmatmul.f32.gmra.mxu3 %v392_v9  ;;  %v385_v11 = vmax.f32 %v346_v10, 0.0 }
  0xf1   : > { %445 = vmatmul.f32.gmra.mxu1 %v385_v11 }
  0xf2   : > { %v369_v12 = vpop.f32.mrf.mxu2 }
  0xf3   : > { %v370_v13 = vadd.f32 %v729_v48, %v369_v12 }
  0xf4   : > { %v348_v14 = vpop.f32.mrf.mxu0 }
  0xf5   : > { %v393_v15 = vmax.f32 %v370_v13, 0.0  ;;  %v349_v16 = vadd.f32 %v729_v48, %v348_v14 }
  0xf7   : > { %469 = vmatmul.f32.gmra.mxu3 %v393_v15  ;;  %v386_v17 = vmax.f32 %v349_v16, 0.0 }
  0xf9   : > { %448 = vmatmul.f32.gmra.mxu1 %v386_v17 }
  0xfa   : > { %v372_v18 = vpop.f32.mrf.mxu2 }
  0xfb   : > { %v373_v19 = vadd.f32 %v729_v48, %v372_v18 }
  0xfc   : > { %v351_v20 = vpop.f32.mrf.mxu0 }
  0xfd   : > { %v394_v21 = vmax.f32 %v373_v19, 0.0  ;;  %v352_v22 = vadd.f32 %v729_v48, %v351_v20 }
  0xff   : > { %472 = vmatmul.f32.gmra.mxu3 %v394_v21  ;;  %v387_v23 = vmax.f32 %v352_v22, 0.0 }
 0x101   : > { %451 = vmatmul.f32.gmra.mxu1 %v387_v23 }
 0x102   : > { %v375_v24 = vpop.f32.mrf.mxu2 }
 0x103   : > { %v376_v25 = vadd.f32 %v729_v48, %v375_v24 }
 0x104   : > { %v354_v26 = vpop.f32.mrf.mxu0 }
 0x105   : > { %v395_v27 = vmax.f32 %v376_v25, 0.0  ;;  %v355_v28 = vadd.f32 %v729_v48, %v354_v26 }
 0x107   : > { %475 = vmatmul.f32.gmra.mxu3 %v395_v27  ;;  %v388_v29 = vmax.f32 %v355_v28, 0.0 }
 0x109   : > { %454 = vmatmul.f32.gmra.mxu1 %v388_v29 }
 0x10a   : > { %v378_v30 = vpop.f32.mrf.mxu2 }
 0x10b   : > { %v379_v31 = vadd.f32 %v729_v48, %v378_v30 }
 0x10d   : > { %v396_v32 = vmax.f32 %v379_v31, 0.0 }
 0x10f   : > { %478 = vmatmul.f32.gmra.mxu3 %v396_v32 }
 0x14e   : > { %v434_v34 = vpop.f32.mrf.mxu1 }
 0x14f   : > { %v435_v35 = vadd.f32 %v730_v33, %v434_v34 }
 0x151   : > { %482 = vst [vmem:[%s1074_s12] sm:$0xff] %v435_v35 }
 0x156   : > { %v437_v36 = vpop.f32.mrf.mxu1 }
 0x157   : > { %v438_v37 = vadd.f32 %v730_v33, %v437_v36 }
 0x159   : > { %483 = vst [vmem:[%s1074_s12 + $0x8] sm:$0xff] %v438_v37 }
 0x15a   : > { %v458_v38 = vpop.f32.mrf.mxu3 }
 0x15b   : > { %v459_v39 = vadd.f32 %v730_v33, %v458_v38 }
 0x15d   : > { %490 = vst [vmem:[%s1074_s12 + $0x40] sm:$0xff] %v459_v39 }
 0x15e   : > { %v440_v40 = vpop.f32.mrf.mxu1 }
 0x15f   : > { %v441_v41 = vadd.f32 %v730_v33, %v440_v40 }
 0x161   : > { %484 = vst [vmem:[%s1074_s12 + $0x10] sm:$0xff] %v441_v41 }
 0x162   : > { %v461_v42 = vpop.f32.mrf.mxu3 }
 0x163   : > { %v462_v43 = vadd.f32 %v730_v33, %v461_v42 }
 0x165   : > { %491 = vst [vmem:[%s1074_s12 + $0x48] sm:$0xff] %v462_v43 }
 0x166   : > { %v443_v44 = vpop.f32.mrf.mxu1 }
 0x167   : > { %v444_v45 = vadd.f32 %v730_v33, %v443_v44 }
 0x169   : > { %485 = vst [vmem:[%s1074_s12 + $0x18] sm:$0xff] %v444_v45 }
 0x16a   : > { %v464_v46 = vpop.f32.mrf.mxu3 }
 0x16b   : > { %v465_v47 = vadd.f32 %v730_v33, %v464_v46 }
 0x16d   : > { %492 = vst [vmem:[%s1074_s12 + $0x50] sm:$0xff] %v465_v47 }
 0x16e   : > { %v446_v48 = vpop.f32.mrf.mxu1 }
 0x16f   : > { %v447_v49 = vadd.f32 %v730_v33, %v446_v48 }
 0x171   : > { %486 = vst [vmem:[%s1074_s12 + $0x20] sm:$0xff] %v447_v49 }
 0x172   : > { %v467_v50 = vpop.f32.mrf.mxu3 }
 0x173   : > { %v468_v51 = vadd.f32 %v730_v33, %v467_v50 }
 0x175   : > { %493 = vst [vmem:[%s1074_s12 + $0x58] sm:$0xff] %v468_v51 }
 0x176   : > { %v449_v52 = vpop.f32.mrf.mxu1 }
 0x177   : > { %v450_v53 = vadd.f32 %v730_v33, %v449_v52 }
 0x179   : > { %487 = vst [vmem:[%s1074_s12 + $0x28] sm:$0xff] %v450_v53 }
 0x17a   : > { %v470_v54 = vpop.f32.mrf.mxu3 }
 0x17b   : > { %v471_v55 = vadd.f32 %v730_v33, %v470_v54 }
 0x17d   : > { %494 = vst [vmem:[%s1074_s12 + $0x60] sm:$0xff] %v471_v55 }
 0x17e   : > { %v452_v56 = vpop.f32.mrf.mxu1 }
 0x17f   : > { %v453_v57 = vadd.f32 %v730_v33, %v452_v56 }
 0x181   : > { %488 = vst [vmem:[%s1074_s12 + $0x30] sm:$0xff] %v453_v57 }
 0x182   : > { %v473_v58 = vpop.f32.mrf.mxu3 }
 0x183   : > { %v474_v59 = vadd.f32 %v730_v33, %v473_v58 }
 0x185   : > { %495 = vst [vmem:[%s1074_s12 + $0x68] sm:$0xff] %v474_v59 }
 0x186   : > { %v455_v60 = vpop.f32.mrf.mxu1 }
 0x187   : > { %v456_v61 = vadd.f32 %v730_v33, %v455_v60 }
 0x189   : > { %489 = vst [vmem:[%s1074_s12 + $0x38] sm:$0xff] %v456_v61 }
 0x18a   : > { %v476_v62 = vpop.f32.mrf.mxu3 }
 0x18b   : > { %v477_v63 = vadd.f32 %v730_v33, %v476_v62 }
 0x18d   : > { %496 = vst [vmem:[%s1074_s12 + $0x70] sm:$0xff] %v477_v63 }
 0x192   : > { %v479_v0 = vpop.f32.mrf.mxu3 }
 0x193   : > { %v480_v1 = vadd.f32 %v730_v33, %v479_v0 }
 0x195   : > { %497 = vst [vmem:[%s1074_s12 + $0x78] sm:$0xff] %v480_v1 }
 0x196   : > { %848 = shalt.err (!%p845_p10)
}
 0x197   : > { %s897_s8 = smov 128   ;;  %s898_s9 = smov 8  }
 0x198   : > { %668 = dma.vmem_to_hbm [thread:$0]  (%p1001_p3), %s512_s6, 2048, %s514_s7, %s499_s26, %s897_s8, %s897_s8, %s898_s9  }
 0x199 PF: > { %s528_s12 = sand.u32 1, %s879_s18   ;;  %p1139_p12 = scmp.ge.s32.totalorder %s891_s21, 2 }
 0x19a   : > { %s529_s13 = scalar_lea.sflag [#allocation4], %s528_s12 }
 0x19b   : > { %p682_p13 = pnand %p1139_p12, %p964_p6 }
 0x19d   : > { %p683_p0 = pneg %p682_p13 }
 0x19f   : > { %874 = dma.done.wait (%p683_p0), %s529_s13, 2048  }
 0x1a0   : > { %876 = vsyncadd (%p683_p0), %s529_s13, 4294965248  ;;  %p19_p5 = scmp.ge.s32.totalorder %s991_s14, 4   ;;  %s1140_s18 = smov %s883_s19 }
 0x1a1   : > { %s1141_s19 = smov %s887_s20  ;;  %s1142_s20 = smov %s1007_s23 }
 0x1a2   : > { %s1143_s21 = smov %s991_s14  ;;  %21 = sbr.rel (!%p19_p5) target bundleno = 6 (0x6), region = 93 }
 0x1a7   :  { %535 = vsyncpa [#allocation3], 1 }
 0x1a8   :  { %537 = vsyncpa [#allocation3 + $0x1], 1 }
 0x1a9   :  { %538 = vsyncpa [#allocation6], 1 }
 0x1aa   :  { %539 = vsyncpa [#allocation4], 1 }
 0x1ab   :  { %541 = vsyncpa [#allocation4 + $0x1], 1 }

// kernel: tpu_custom_call.1
= control target key start
LH: loop header
LB: loop body
LE: loop exit
PB: predicated region body
PF: predicated region fallthrough
CT: control target
= control target key end

     0   :  { %10 = vsyncpa [#allocation3], 0  ;;  %s1126_s0 = inlined_call_operand.hbm [shape: f32[256,128], index: 0, kind: input, shape index: {}]   ;;  %s1127_s1 = inlined_call_operand.hbm [shape: f32[128,128], index: 1, kind: input, shape index: {}]   ;;  %s1128_s2 = inlined_call_operand.vmem [shape: f32[1,128], index: 2, kind: input, shape index: {}]   ;;  %s1129_s3 = inlined_call_operand.hbm [shape: f32[128,128], index: 3, kind: input, shape index: {}]   ;;  %s1130_s4 = inlined_call_operand.vmem [shape: f32[1,128], index: 4, kind: input, shape index: {}]   ;;  %s1131_s5 = inlined_call_operand.hbm [shape: f32[256,128], index: 5, kind: output, shape index: {}]  }
   0x1   :  { %12 = vsyncpa [#allocation3 + $0x1], 0 }
   0x2   :  { %13 = vsyncpa [#allocation6], 0 }
   0x3   :  { %14 = vsyncpa [#allocation4], 0 }
   0x4   :  { %16 = vsyncpa [#allocation4 + $0x1], 0  ;;  %s929_s18 = smov 0   ;;  %s931_s19 = smov 0  }
   0x5   :  { %s933_s20 = smov 0   ;;  %s935_s21 = smov 0  }
   0x6 LB: > { %s950_s22 = sadd.s32 4294967295, %s891_s21   ;;  %s606_s23 = sadd.s32 4294967294, %s891_s21   ;;  %s891_s21 = sphi %s935_s21, %s1143_s21   ;;  %s887_s20 = sphi %s933_s20, %s1142_s20   ;;  %s883_s19 = sphi %s931_s19, %s1141_s19   ;;  %s879_s18 = sphi %s929_s18, %s1140_s18  }
   0x7   : > { %p42_p0 = scmp.ne.s32.totalorder %s883_s19, %s879_s18  ;;  %p43_p1 = scmp.eq.s32.totalorder %s950_s22, 0 }
   0x8   : > { %p150_p2 = scmp.eq.s32.totalorder %s950_s22, 1  ;;  %p156_p3 = scmp.eq.s32.totalorder %s606_s23, 1 }
   0x9   : > { %p959_p4 = por %p43_p1, %p42_p0  ;;  %p607_p5 = scmp.ge.s32.totalorder %s891_s21, 1 }
   0xa   : > { %p964_p6 = por %p156_p3, %p42_p0  ;;  %p163_p7 = scmp.lt.s32.totalorder %s891_s21, 3 }
   0xb   : > { %s174_s28 = sshll.u32 %s1127_s1, 4  ;;  %s893_s30 = smov [#allocation5]   ;;  %s175_s28 = int_to_ptr.hbm [resolvable:$true] %s174_s28 }
   0xc   : > { %p972_p8 = pnand %p607_p5, %p163_p7  ;;  %s176_s6 = sshll.u32 %s893_s30, 4  ;;  %s177_s6 = int_to_ptr.vmem [resolvable:$true] %s176_s6 }
   0xd   : > { %s191_s9 = sshll.u32 %s1129_s3, 4  ;;  %s1132_s10 = smov 128   ;;  %s192_s9 = int_to_ptr.hbm [resolvable:$true] %s191_s9 }
   0xe   : > { %p670_p9 = pneg %p972_p8  ;;  %s895_s11 = smov 8  }
   0xf   : > { %s896_s12 = smov [#allocation7]   ;;  %s991_s14 = sadd.s32 1, %s891_s21  }
  0x10   : > { %p671_p10 = pnand %p670_p9, %p43_p1  ;;  %s193_s13 = sshll.u32 %s896_s12, 4  ;;  %s194_s13 = int_to_ptr.vmem [resolvable:$true] %s193_s13 }
  0x11   : > { %s29_s15 = sadd.s32 1, %s887_s20  ;;  %s26_s16 = ssub.s32 %s891_s21, %s991_s14 }
  0x12   : > { %673 = dma.hbm_to_vmem [thread:$0]  (!%p671_p10), %s175_s28, 2048, %s177_s6, [#allocation6], %s1132_s10, %s1132_s10, %s895_s11  }
  0x13   : > { %676 = dma.hbm_to_vmem [thread:$0]  (!%p671_p10), %s192_s9, 2048, %s194_s13, [#allocation6], %s1132_s10, %s1132_s10, %s895_s11  }
  0x14   : > { %p36_p12 = scmp.ne.s32.totalorder %s887_s20, %s883_s19  ;;  %p27_p13 = scmp.eq.s32.totalorder %s26_s16, 0 }
  0x15   : > { %p37_p0 = scmp.eq.s32.totalorder %s891_s21, 0  ;;  %p687_p5 = scmp.lt.s32.totalorder %s891_s21, 2 }
  0x16   : > { %p1001_p3 = por %p150_p2, %p36_p12  ;;  %s210_s26 = sand.u32 1, %s887_s20  }
  0x17   : > { %s1007_s23 = scalar_select %p27_p13, %s887_s20, %s29_s15  }
  0x18   : > { %p38_p7 = por %p37_p0, %p36_p12  ;;  %s611_s27 = sshll.u32 %s210_s26, 7 }
  0x19   : > { %s624_s28 = sshll.u32 %s891_s21, 7  ;;  %s214_s8 = scalar_lea.vmem [#allocation2], %s611_s27 }
  0x1a   : > { %s219_s7 = scalar_lea.hbm %s1126_s0, %s624_s28  ;;  %s222_s9 = sshll.u32 %s214_s8, 4  ;;  %s223_s9 = int_to_ptr.vmem [resolvable:$true] %s222_s9 }
  0x1b   : > { %s220_s12 = sshll.u32 %s219_s7, 4  ;;  %p1014_p2 = pnand %p687_p5, %p38_p7  ;;  %s221_s12 = int_to_ptr.hbm [resolvable:$true] %s220_s12 }
  0x1c   : > { %s211_s15 = scalar_lea.sflag [#allocation3], %s210_s26  ;;  %s791_s16 = sshra.s32 %s221_s12, 4  ;;  %s792_s16 = int_to_ptr.hbm [resolvable:$true] %s791_s16 }
  0x1d   : > { %s793_s10 = scalar_lea.hbm %s792_s16, 128  ;;  %p795_p10 = pneg %p1014_p2 }
  0x1e   : > { %p794_p9 = scmp.ne.s32.totalorder %s792_s16, %s793_s10  ;;  %s798_s30 = scalar_lea.hbm %s1126_s0, 256 }
  0x1f   : > { %p799_p0 = scmp.lt.s32.totalorder %s792_s16, %s1126_s0  ;;  %p800_p5 = scmp.lt.s32.totalorder %s798_s30, %s793_s10 }
  0x20   : > { %p796_p12 = pnand %p795_p10, %p794_p9 }
  0x21   : > { %p801_p7 = por %p800_p5, %p799_p0 }
  0x22   : > { %p797_p13 = pneg %p796_p12 }
  0x24   : > { %p802_p11 = pnand %p801_p7, %p797_p13 }
  0x26   : > { %805 = shalt.err (!%p802_p11)
}
  0x27   : > { %s1138_s26 = smov 128   ;;  %234 = sbr.rel (%p972_p8) target bundleno = 409 (0x199), region = 40 }
  0x28   : > { %680 = dma.hbm_to_vmem [thread:$0]  (!%p1014_p2), %s221_s12, 2048, %s223_s9, %s211_s15, %s1138_s26, %s1138_s26, %s895_s11  }
  0x29   : > { %s1034_s8 = sand.u32 (!%p972_p8), 1, %s883_s19  }
  0x2a   : > { %s615_s10 = sshll.u32 (!%p972_p8), %s1034_s8, 7  ;;  %s237_s16 = scalar_lea.sflag (!%p972_p8), [#allocation3], %s1034_s8 }
  0x2b   : > { %s1040_s28 = scalar_lea.vmem (!%p972_p8), [#allocation2], %s615_s10 }
  0x2c   : > { %866 = dma.done.wait (%p959_p4), %s237_s16, 2048  }
  0x2d   : > { %868 = vsyncadd (%p959_p4), %s237_s16, 4294965248 }
  0x2e   : > { %870 = dma.done.wait (%p43_p1), [#allocation6], 4096  }
  0x2f   : > { %872 = vsyncadd (%p43_p1), [#allocation6], 4294963200  ;;  %v311_v0 = vld [vmem:[#allocation5 + $0x78] sm:$0xff]  ;;  %v310_v1 = vld [vmem:[#allocation5 + $0x70] sm:$0xff]  ;;  %s1074_s12 = scalar_lea.vmem [#allocation8], %s615_s10  ;;  %s625_s13 = sshll.u32 %s950_s22, 7 }
  0x30   : > { %626 = vmatpush.msra.mxu2 %v311_v0  ;;  %316 = vmatpush.msra.mxu0 %v311_v0  ;;  %v309_v2 = vld [vmem:[#allocation5 + $0x68] sm:$0xff]  ;;  %v308_v3 = vld [vmem:[#allocation5 + $0x60] sm:$0xff]  ;;  %v307_v4 = vld [vmem:[#allocation5 + $0x58] sm:$0xff]  ;;  %s510_s30 = scalar_lea.hbm %s1131_s5, %s625_s13  ;;  %s511_s6 = sshll.u32 %s1074_s12, 4  ;;  %s512_s6 = int_to_ptr.vmem [resolvable:$true] %s511_s6 }
  0x31   : > { %v306_v5 = vld [vmem:[#allocation5 + $0x50] sm:$0xff]  ;;  %v305_v6 = vld [vmem:[#allocation5 + $0x48] sm:$0xff]  ;;  %v304_v7 = vld [vmem:[#allocation5 + $0x40] sm:$0xff]  ;;  %s513_s7 = sshll.u32 %s510_s30, 4  ;;  %s499_s26 = scalar_lea.sflag [#allocation4], %s1034_s8  ;;  %s514_s7 = int_to_ptr.hbm [resolvable:$true] %s513_s7 }
  0x32   : > { %627 = vmatpush.msra.mxu2 %v310_v1  ;;  %317 = vmatpush.msra.mxu0 %v310_v1  ;;  %v303_v8 = vld [vmem:[#allocation5 + $0x38] sm:$0xff]  ;;  %v302_v9 = vld [vmem:[#allocation5 + $0x30] sm:$0xff]  ;;  %v301_v10 = vld [vmem:[#allocation5 + $0x28] sm:$0xff]  ;;  %s835_s10 = sshra.s32 %s514_s7, 4  ;;  %s841_s24 = scalar_lea.hbm %s1131_s5, 256  ;;  %s836_s10 = int_to_ptr.hbm [resolvable:$true] %s835_s10 }
  0x33   : > { %v300_v11 = vld [vmem:[#allocation5 + $0x20] sm:$0xff]  ;;  %v299_v12 = vld [vmem:[#allocation5 + $0x18] sm:$0xff]  ;;  %v298_v13 = vld [vmem:[#allocation5 + $0x10] sm:$0xff]  ;;  %s837_s16 = scalar_lea.hbm %s836_s10, 128  ;;  %p842_p11 = scmp.lt.s32.totalorder %s836_s10, %s1131_s5 }
  0x34   : > { %628 = vmatpush.msra.mxu2 %v309_v2  ;;  %318 = vmatpush.msra.mxu0 %v309_v2  ;;  %v297_v14 = vld [vmem:[#allocation5 + $0x8] sm:$0xff]  ;;  %v296_v15 = vld [vmem:[#allocation5] sm:$0xff]  ;;  %v290_v20 = vld [vmem:[%s1040_s28 + $0x50] sm:$0xff]  ;;  %p838_p1 = scmp.ne.s32.totalorder %s836_s10, %s837_s16  ;;  %p843_p2 = scmp.lt.s32.totalorder %s841_s24, %s837_s16 }
  0x35   : > { %v288_v16 = vld [vmem:[%s1040_s28 + $0x40] sm:$0xff]  ;;  %v289_v18 = vld [vmem:[%s1040_s28 + $0x48] sm:$0xff]  ;;  %v282_v21 = vld [vmem:[%s1040_s28 + $0x10] sm:$0xff] }
  0x36   : > { %629 = vmatpush.msra.mxu2 %v308_v3  ;;  %319 = vmatpush.msra.mxu0 %v308_v3  ;;  %v280_v17 = vld [vmem:[%s1040_s28] sm:$0xff]  ;;  %v281_v19 = vld [vmem:[%s1040_s28 + $0x8] sm:$0xff]  ;;  %v291_v22 = vld [vmem:[%s1040_s28 + $0x58] sm:$0xff]  ;;  %p839_p4 = pnand %p838_p1, %p1001_p3  ;;  %p844_p9 = por %p843_p2, %p842_p11 }
  0x37   : > { %v283_v23 = vld [vmem:[%s1040_s28 + $0x18] sm:$0xff]  ;;  %v411_v25 = vld [vmem:[#allocation7 + $0x70] sm:$0xff]  ;;  %v410_v26 = vld [vmem:[#allocation7 + $0x68] sm:$0xff] }
  0x38   : > { %630 = vmatpush.msra.mxu2 %v307_v4  ;;  %320 = vmatpush.msra.mxu0 %v307_v4  ;;  %v412_v24 = vld [vmem:[#allocation7 + $0x78] sm:$0xff]  ;;  %v409_v27 = vld [vmem:[#allocation7 + $0x60] sm:$0xff]  ;;  %v407_v31 = vld [vmem:[#allocation7 + $0x50] sm:$0xff]  ;;  %p840_p8 = pneg %p839_p4 }
  0x39   : > { %642 = vmatpush.msra.mxu3 %v412_v24  ;;  %417 = vmatpush.msra.mxu1 %v412_v24  ;;  %v292_v28 = vld [vmem:[%s1040_s28 + $0x60] sm:$0xff]  ;;  %v408_v30 = vld [vmem:[#allocation7 + $0x58] sm:$0xff]  ;;  %v406_v32 = vld [vmem:[#allocation7 + $0x48] sm:$0xff] }
  0x3a   : > { %631 = vmatpush.msra.mxu2 %v306_v5  ;;  %321 = vmatpush.msra.mxu0 %v306_v5  ;;  %v284_v29 = vld [vmem:[%s1040_s28 + $0x20] sm:$0xff]  ;;  %v293_v34 = vld [vmem:[%s1040_s28 + $0x68] sm:$0xff]  ;;  %v404_v36 = vld [vmem:[#allocation7 + $0x38] sm:$0xff]  ;;  %p845_p10 = pnand %p844_p9, %p840_p8 }
  0x3b   : > { %643 = vmatpush.msra.mxu3 %v411_v25  ;;  %418 = vmatpush.msra.mxu1 %v411_v25  ;;  %v405_v33 = vld [vmem:[#allocation7 + $0x40] sm:$0xff]  ;;  %v285_v35 = vld [vmem:[%s1040_s28 + $0x28] sm:$0xff]  ;;  %v403_v37 = vld [vmem:[#allocation7 + $0x30] sm:$0xff] }
  0x3c   : > { %632 = vmatpush.msra.mxu2 %v305_v6  ;;  %322 = vmatpush.msra.mxu0 %v305_v6  ;;  %v402_v38 = vld [vmem:[#allocation7 + $0x28] sm:$0xff]  ;;  %v401_v39 = vld [vmem:[#allocation7 + $0x20] sm:$0xff]  ;;  %v294_v40 = vld [vmem:[%s1040_s28 + $0x70] sm:$0xff] }
  0x3d   : > { %644 = vmatpush.msra.mxu3 %v410_v26  ;;  %419 = vmatpush.msra.mxu1 %v410_v26  ;;  %v286_v41 = vld [vmem:[%s1040_s28 + $0x30] sm:$0xff]  ;;  %v400_v42 = vld [vmem:[#allocation7 + $0x18] sm:$0xff]  ;;  %v398_v46 = vld [vmem:[#allocation7 + $0x8] sm:$0xff] }
  0x3e   : > { %633 = vmatpush.msra.mxu2 %v304_v7  ;;  %323 = vmatpush.msra.mxu0 %v304_v7  ;;  %v295_v43 = vld [vmem:[%s1040_s28 + $0x78] sm:$0xff]  ;;  %v399_v45 = vld [vmem:[#allocation7 + $0x10] sm:$0xff]  ;;  %v397_v47 = vld [vmem:[#allocation7] sm:$0xff] }
  0x3f   : > { %645 = vmatpush.msra.mxu3 %v409_v27  ;;  %420 = vmatpush.msra.mxu1 %v409_v27  ;;  %v287_v44 = vld [vmem:[%s1040_s28 + $0x38] sm:$0xff]  ;;  %v729_v48 = vld [vmem:[%s1128_s2] ss:$0 sm:$0xff] }
  0x40   : > { %634 = vmatpush.msra.mxu2 %v303_v8  ;;  %324 = vmatpush.msra.mxu0 %v303_v8 }
  0x41   : > { %646 = vmatpush.msra.mxu3 %v408_v30  ;;  %421 = vmatpush.msra.mxu1 %v408_v30 }
  0x42   : > { %635 = vmatpush.msra.mxu2 %v302_v9  ;;  %325 = vmatpush.msra.mxu0 %v302_v9 }
  0x43   : > { %647 = vmatpush.msra.mxu3 %v407_v31  ;;  %422 = vmatpush.msra.mxu1 %v407_v31 }
  0x44   : > { %636 = vmatpush.msra.mxu2 %v301_v10  ;;  %326 = vmatpush.msra.mxu0 %v301_v10 }
  0x45   : > { %648 = vmatpush.msra.mxu3 %v406_v32  ;;  %423 = vmatpush.msra.mxu1 %v406_v32 }
  0x46   : > { %637 = vmatpush.msra.mxu2 %v300_v11  ;;  %327 = vmatpush.msra.mxu0 %v300_v11 }
  0x47   : > { %649 = vmatpush.msra.mxu3 %v405_v33  ;;  %424 = vmatpush.msra.mxu1 %v405_v33  ;;  %v730_v33 = vld [vmem:[%s1130_s4] ss:$0 sm:$0xff] }
  0x48   : > { %638 = vmatpush.msra.mxu2 %v299_v12  ;;  %328 = vmatpush.msra.mxu0 %v299_v12 }
  0x49   : > { %650 = vmatpush.msra.mxu3 %v404_v36  ;;  %425 = vmatpush.msra.mxu1 %v404_v36 }
  0x4a   : > { %639 = vmatpush.msra.mxu2 %v298_v13  ;;  %329 = vmatpush.msra.mxu0 %v298_v13 }
  0x4b   : > { %651 = vmatpush.msra.mxu3 %v403_v37  ;;  %426 = vmatpush.msra.mxu1 %v403_v37 }
  0x4c   : > { %640 = vmatpush.msra.mxu2 %v297_v14  ;;  %330 = vmatpush.msra.mxu0 %v297_v14 }
  0x4d   : > { %652 = vmatpush.msra.mxu3 %v402_v38  ;;  %427 = vmatpush.msra.mxu1 %v402_v38 }
  0x4e   : > { %641 = vmatpush.msra.mxu2 %v296_v15  ;;  %331 = vmatpush.msra.mxu0 %v296_v15 }
  0x4f   : > { %356 = vmatmul.f32.vlgmr.msra.gmra.mxu2 %v288_v16  ;;  %332 = vmatmul.f32.vlgmr.msra.gmra.mxu0 %v280_v17 }
  0x50   : > { %653 = vmatpush.msra.mxu3 %v401_v39  ;;  %428 = vmatpush.msra.mxu1 %v401_v39 }
  0x52   : > { %654 = vmatpush.msra.mxu3 %v400_v42  ;;  %429 = vmatpush.msra.mxu1 %v400_v42 }
  0x54   : > { %655 = vmatpush.msra.mxu3 %v399_v45  ;;  %430 = vmatpush.msra.mxu1 %v399_v45 }
  0x56   : > { %656 = vmatpush.msra.mxu3 %v398_v46  ;;  %431 = vmatpush.msra.mxu1 %v398_v46 }
  0x57   : > { %359 = vmatmul.f32.gmra.mxu2 %v289_v18  ;;  %335 = vmatmul.f32.gmra.mxu0 %v281_v19 }
  0x58   : > { %657 = vmatpush.msra.mxu3 %v397_v47  ;;  %432 = vmatpush.msra.mxu1 %v397_v47 }
  0x5f   : > { %362 = vmatmul.f32.gmra.mxu2 %v290_v20  ;;  %338 = vmatmul.f32.gmra.mxu0 %v282_v21 }
  0x67   : > { %365 = vmatmul.f32.gmra.mxu2 %v291_v22  ;;  %341 = vmatmul.f32.gmra.mxu0 %v283_v23 }
  0x6f   : > { %368 = vmatmul.f32.gmra.mxu2 %v292_v28  ;;  %344 = vmatmul.f32.gmra.mxu0 %v284_v29 }
  0x77   : > { %371 = vmatmul.f32.gmra.mxu2 %v293_v34  ;;  %347 = vmatmul.f32.gmra.mxu0 %v285_v35 }
  0x7f   : > { %374 = vmatmul.f32.gmra.mxu2 %v294_v40  ;;  %350 = vmatmul.f32.gmra.mxu0 %v286_v41 }
  0x87   : > { %377 = vmatmul.f32.gmra.mxu2 %v295_v43  ;;  %353 = vmatmul.f32.gmra.mxu0 %v287_v44 }
  0xcc   : > { %v333_v49 = vpop.f32.mrf.mxu0 }
  0xcd   : > { %v334_v50 = vadd.f32 %v729_v48, %v333_v49 }
  0xcf   : > { %v381_v51 = vmax.f32 %v334_v50, 0.0 }
  0xd1   : > { %433 = vmatmul.f32.vlgmr.msra.gmra.mxu1 %v381_v51 }
  0xd2   : > { %v357_v52 = vpop.f32.mrf.mxu2 }
  0xd3   : > { %v358_v53 = vadd.f32 %v729_v48, %v357_v52 }
  0xd4   : > { %v336_v54 = vpop.f32.mrf.mxu0 }
  0xd5   : > { %v389_v55 = vmax.f32 %v358_v53, 0.0  ;;  %v337_v56 = vadd.f32 %v729_v48, %v336_v54 }
  0xd7   : > { %457 = vmatmul.f32.vlgmr.msra.gmra.mxu3 %v389_v55  ;;  %v382_v57 = vmax.f32 %v337_v56, 0.0 }
  0xd9   : > { %436 = vmatmul.f32.gmra.mxu1 %v382_v57 }
  0xda   : > { %v360_v58 = vpop.f32.mrf.mxu2 }
  0xdb   : > { %v361_v59 = vadd.f32 %v729_v48, %v360_v58 }
  0xdc   : > { %v339_v60 = vpop.f32.mrf.mxu0 }
  0xdd   : > { %v390_v61 = vmax.f32 %v361_v59, 0.0  ;;  %v340_v62 = vadd.f32 %v729_v48, %v339_v60 }
  0xdf   : > { %460 = vmatmul.f32.gmra.mxu3 %v390_v61  ;;  %v383_v63 = vmax.f32 %v340_v62, 0.0 }
  0xe1   : > { %439 = vmatmul.f32.gmra.mxu1 %v383_v63 }
  0xe2   : > { %v363_v0 = vpop.f32.mrf.mxu2 }
  0xe3   : > { %v364_v1 = vadd.f32 %v729_v48, %v363_v0 }
  0xe4   : > { %v342_v2 = vpop.f32.mrf.mxu0 }
  0xe5   : > { %v391_v3 = vmax.f32 %v364_v1, 0.0  ;;  %v343_v4 = vadd.f32 %v729_v48, %v342_v2 }
  0xe7   : > { %463 = vmatmul.f32.gmra.mxu3 %v391_v3  ;;  %v384_v5 = vmax.f32 %v343_v4, 0.0 }
  0xe9   : > { %442 = vmatmul.f32.gmra.mxu1 %v384_v5 }
  0xea   : > { %v366_v6 = vpop.f32.mrf.mxu2 }
  0xeb   : > { %v367_v7 = vadd.f32 %v729_v48, %v366_v6 }
  0xec   : > { %v345_v8 = vpop.f32.mrf.mxu0 }
  0xed   : > { %v392_v9 = vmax.f32 %v367_v7, 0.0  ;;  %v346_v10 = vadd.f32 %v729_v48, %v345_v8 }
  0xef   : > { %466 = vmatmul.f32.gmra.mxu3 %v392_v9  ;;  %v385_v11 = vmax.f32 %v346_v10, 0.0 }
  0xf1   : > { %445 = vmatmul.f32.gmra.mxu1 %v385_v11 }
  0xf2   : > { %v369_v12 = vpop.f32.mrf.mxu2 }
  0xf3   : > { %v370_v13 = vadd.f32 %v729_v48, %v369_v12 }
  0xf4   : > { %v348_v14 = vpop.f32.mrf.mxu0 }
  0xf5   : > { %v393_v15 = vmax.f32 %v370_v13, 0.0  ;;  %v349_v16 = vadd.f32 %v729_v48, %v348_v14 }
  0xf7   : > { %469 = vmatmul.f32.gmra.mxu3 %v393_v15  ;;  %v386_v17 = vmax.f32 %v349_v16, 0.0 }
  0xf9   : > { %448 = vmatmul.f32.gmra.mxu1 %v386_v17 }
  0xfa   : > { %v372_v18 = vpop.f32.mrf.mxu2 }
  0xfb   : > { %v373_v19 = vadd.f32 %v729_v48, %v372_v18 }
  0xfc   : > { %v351_v20 = vpop.f32.mrf.mxu0 }
  0xfd   : > { %v394_v21 = vmax.f32 %v373_v19, 0.0  ;;  %v352_v22 = vadd.f32 %v729_v48, %v351_v20 }
  0xff   : > { %472 = vmatmul.f32.gmra.mxu3 %v394_v21  ;;  %v387_v23 = vmax.f32 %v352_v22, 0.0 }
 0x101   : > { %451 = vmatmul.f32.gmra.mxu1 %v387_v23 }
 0x102   : > { %v375_v24 = vpop.f32.mrf.mxu2 }
 0x103   : > { %v376_v25 = vadd.f32 %v729_v48, %v375_v24 }
 0x104   : > { %v354_v26 = vpop.f32.mrf.mxu0 }
 0x105   : > { %v395_v27 = vmax.f32 %v376_v25, 0.0  ;;  %v355_v28 = vadd.f32 %v729_v48, %v354_v26 }
 0x107   : > { %475 = vmatmul.f32.gmra.mxu3 %v395_v27  ;;  %v388_v29 = vmax.f32 %v355_v28, 0.0 }
 0x109   : > { %454 = vmatmul.f32.gmra.mxu1 %v388_v29 }
 0x10a   : > { %v378_v30 = vpop.f32.mrf.mxu2 }
 0x10b   : > { %v379_v31 = vadd.f32 %v729_v48, %v378_v30 }
 0x10d   : > { %v396_v32 = vmax.f32 %v379_v31, 0.0 }
 0x10f   : > { %478 = vmatmul.f32.gmra.mxu3 %v396_v32 }
 0x14e   : > { %v434_v34 = vpop.f32.mrf.mxu1 }
 0x14f   : > { %v435_v35 = vadd.f32 %v730_v33, %v434_v34 }
 0x151   : > { %482 = vst [vmem:[%s1074_s12] sm:$0xff] %v435_v35 }
 0x156   : > { %v437_v36 = vpop.f32.mrf.mxu1 }
 0x157   : > { %v438_v37 = vadd.f32 %v730_v33, %v437_v36 }
 0x159   : > { %483 = vst [vmem:[%s1074_s12 + $0x8] sm:$0xff] %v438_v37 }
 0x15a   : > { %v458_v38 = vpop.f32.mrf.mxu3 }
 0x15b   : > { %v459_v39 = vadd.f32 %v730_v33, %v458_v38 }
 0x15d   : > { %490 = vst [vmem:[%s1074_s12 + $0x40] sm:$0xff] %v459_v39 }
 0x15e   : > { %v440_v40 = vpop.f32.mrf.mxu1 }
 0x15f   : > { %v441_v41 = vadd.f32 %v730_v33, %v440_v40 }
 0x161   : > { %484 = vst [vmem:[%s1074_s12 + $0x10] sm:$0xff] %v441_v41 }
 0x162   : > { %v461_v42 = vpop.f32.mrf.mxu3 }
 0x163   : > { %v462_v43 = vadd.f32 %v730_v33, %v461_v42 }
 0x165   : > { %491 = vst [vmem:[%s1074_s12 + $0x48] sm:$0xff] %v462_v43 }
 0x166   : > { %v443_v44 = vpop.f32.mrf.mxu1 }
 0x167   : > { %v444_v45 = vadd.f32 %v730_v33, %v443_v44 }
 0x169   : > { %485 = vst [vmem:[%s1074_s12 + $0x18] sm:$0xff] %v444_v45 }
 0x16a   : > { %v464_v46 = vpop.f32.mrf.mxu3 }
 0x16b   : > { %v465_v47 = vadd.f32 %v730_v33, %v464_v46 }
 0x16d   : > { %492 = vst [vmem:[%s1074_s12 + $0x50] sm:$0xff] %v465_v47 }
 0x16e   : > { %v446_v48 = vpop.f32.mrf.mxu1 }
 0x16f   : > { %v447_v49 = vadd.f32 %v730_v33, %v446_v48 }
 0x171   : > { %486 = vst [vmem:[%s1074_s12 + $0x20] sm:$0xff] %v447_v49 }
 0x172   : > { %v467_v50 = vpop.f32.mrf.mxu3 }
 0x173   : > { %v468_v51 = vadd.f32 %v730_v33, %v467_v50 }
 0x175   : > { %493 = vst [vmem:[%s1074_s12 + $0x58] sm:$0xff] %v468_v51 }
 0x176   : > { %v449_v52 = vpop.f32.mrf.mxu1 }
 0x177   : > { %v450_v53 = vadd.f32 %v730_v33, %v449_v52 }
 0x179   : > { %487 = vst [vmem:[%s1074_s12 + $0x28] sm:$0xff] %v450_v53 }
 0x17a   : > { %v470_v54 = vpop.f32.mrf.mxu3 }
 0x17b   : > { %v471_v55 = vadd.f32 %v730_v33, %v470_v54 }
 0x17d   : > { %494 = vst [vmem:[%s1074_s12 + $0x60] sm:$0xff] %v471_v55 }
 0x17e   : > { %v452_v56 = vpop.f32.mrf.mxu1 }
 0x17f   : > { %v453_v57 = vadd.f32 %v730_v33, %v452_v56 }
 0x181   : > { %488 = vst [vmem:[%s1074_s12 + $0x30] sm:$0xff] %v453_v57 }
 0x182   : > { %v473_v58 = vpop.f32.mrf.mxu3 }
 0x183   : > { %v474_v59 = vadd.f32 %v730_v33, %v473_v58 }
 0x185   : > { %495 = vst [vmem:[%s1074_s12 + $0x68] sm:$0xff] %v474_v59 }
 0x186   : > { %v455_v60 = vpop.f32.mrf.mxu1 }
 0x187   : > { %v456_v61 = vadd.f32 %v730_v33, %v455_v60 }
 0x189   : > { %489 = vst [vmem:[%s1074_s12 + $0x38] sm:$0xff] %v456_v61 }
 0x18a   : > { %v476_v62 = vpop.f32.mrf.mxu3 }
 0x18b   : > { %v477_v63 = vadd.f32 %v730_v33, %v476_v62 }
 0x18d   : > { %496 = vst [vmem:[%s1074_s12 + $0x70] sm:$0xff] %v477_v63 }
 0x192   : > { %v479_v0 = vpop.f32.mrf.mxu3 }
 0x193   : > { %v480_v1 = vadd.f32 %v730_v33, %v479_v0 }
 0x195   : > { %497 = vst [vmem:[%s1074_s12 + $0x78] sm:$0xff] %v480_v1 }
 0x196   : > { %848 = shalt.err (!%p845_p10)
}
 0x197   : > { %s897_s8 = smov 128   ;;  %s898_s9 = smov 8  }
 0x198   : > { %668 = dma.vmem_to_hbm [thread:$0]  (%p1001_p3), %s512_s6, 2048, %s514_s7, %s499_s26, %s897_s8, %s897_s8, %s898_s9  }
 0x199 PF: > { %s528_s12 = sand.u32 1, %s879_s18   ;;  %p1139_p12 = scmp.ge.s32.totalorder %s891_s21, 2 }
 0x19a   : > { %s529_s13 = scalar_lea.sflag [#allocation4], %s528_s12 }
 0x19b   : > { %p682_p13 = pnand %p1139_p12, %p964_p6 }
 0x19d   : > { %p683_p0 = pneg %p682_p13 }
 0x19f   : > { %874 = dma.done.wait (%p683_p0), %s529_s13, 2048  }
 0x1a0   : > { %876 = vsyncadd (%p683_p0), %s529_s13, 4294965248  ;;  %p19_p5 = scmp.ge.s32.totalorder %s991_s14, 4   ;;  %s1140_s18 = smov %s883_s19 }
 0x1a1   : > { %s1141_s19 = smov %s887_s20  ;;  %s1142_s20 = smov %s1007_s23 }
 0x1a2   : > { %s1143_s21 = smov %s991_s14  ;;  %21 = sbr.rel (!%p19_p5) target bundleno = 6 (0x6), region = 93 }
 0x1a7   :  { %535 = vsyncpa [#allocation3], 1 }
 0x1a8   :  { %537 = vsyncpa [#allocation3 + $0x1], 1 }
 0x1a9   :  { %538 = vsyncpa [#allocation6], 1 }
 0x1aa   :  { %539 = vsyncpa [#allocation4], 1 }
 0x1ab   :  { %541 = vsyncpa [#allocation4 + $0x1], 1 }

</bundles_post_ra>
